<compile_context>
chip_gen: v7x
topology: tpu7x:2x2x1
jax: 0.10.0
libtpu: 0.0.40
codegen_flags: <defaults>
</compile_context>

<pallas_src>
import functools

import jax
import jax.numpy as jnp
from jax.experimental import pallas as pl
from jax.experimental.pallas import tpu as pltpu


# ---------------------------------------------------------------------------
# Kernels
# ---------------------------------------------------------------------------
def _kernel_eval(x_ref, w_ref, b_ref, o_ref, *, bblk):
    C, T = o_ref.shape[-2], o_ref.shape[-1]
    w = w_ref[...]
    bias = jnp.broadcast_to(b_ref[...], (C, T))        # hoisted: once per grid step

    def body(i, carry):
        x = x_ref[i]                                   # (C, T) storage dtype
        y = jnp.dot(w, x, preferred_element_type=jnp.float32) + bias   # MXU, f32 acc
        o_ref[i] = (x.astype(jnp.float32) + y).astype(o_ref.dtype)
        return carry

    jax.lax.fori_loop(0, bblk, body, None, unroll=True)


def _kernel_train(scale_ref, x_ref, w_ref, b_ref, o_ref, *, bblk):
    C, T = o_ref.shape[-2], o_ref.shape[-1]
    w = w_ref[...]
    bias = jnp.broadcast_to(b_ref[...], (C, T))        # hoisted: once per grid step
    b0 = pl.program_id(0) * bblk

    def body(i, carry):
        s = scale_ref[b0 + i]                          # per-sample scale (SMEM scalar)
        x = x_ref[i]
        y = jnp.dot(w, x, preferred_element_type=jnp.float32) + bias
        o_ref[i] = (x.astype(jnp.float32) + y * s).astype(o_ref.dtype)
        return carry

    jax.lax.fori_loop(0, bblk, body, None, unroll=True)


# ---------------------------------------------------------------------------
# Hardware-aware block-size heuristics
# ---------------------------------------------------------------------------
def _physical_vmem_bytes() -> int:
    try:
        info = pltpu.get_tpu_info()
        return int(getattr(info, "vmem_capacity_bytes", 64 << 20))
    except Exception:  # noqa: BLE001 - fall back to the most conservative size
        return 64 << 20            # v7x per-TensorCore VMEM


def _target_block_bytes(phys_vmem: int) -> int:
    # v7x (64 MiB / TC): ~3 MiB blocks keep pipeline/grid depth and leave room.
    # v5e / v6e (128 MiB physical): 4 MiB blocks; the scoped limit is raised
    # explicitly below so v5e's 16 MiB default is not a constraint.
    if phys_vmem <= (64 << 20):
        return 3 << 20
    return 4 << 20


def _pick_thw(C, HW, itemsize, target_bytes):
    if C * HW * itemsize <= target_bytes:
        return HW                              # whole spatial extent fits the budget
    if HW < 128:
        return HW                              # lane dim can't be tiled below full extent
    rows = (target_bytes // (C * itemsize)) // 128 * 128
    rows = max(rows, 128)                      # always lane-dense multiples of 128
    cap = HW if HW % 128 == 0 else (HW // 128) * 128
    return min(rows, cap)                      # ragged last tile handled via cdiv grid


def _pick_bblk(B, per_sample_bytes, target_bytes):
    # Bound the unrolled live ranges: cap at 4 samples when per-sample tiles are large.
    cap = 8 if per_sample_bytes <= (512 << 10) else 4
    best = 1
    for cand in range(2, min(B, cap) + 1):
        if B % cand != 0:
            continue
        if cand * per_sample_bytes > target_bytes:
            continue
        if B >= 8 and B // cand < 4:
            continue                           # keep >=4 batch steps (megacore / pipeline depth)
        best = cand
    return best


def _choose_blocks(B, C, HW, itemsize, target_bytes):
    thw = _pick_thw(C, HW, itemsize, target_bytes)
    if thw == HW:
        bblk = _pick_bblk(B, C * HW * itemsize, target_bytes)
    else:
        bblk = 1
    return bblk, thw


# ---------------------------------------------------------------------------
# Single-buffer (grid-invariant) BlockSpec, feature-probed once
# ---------------------------------------------------------------------------
@functools.lru_cache(maxsize=1)
def _buffered_single_supported() -> bool:
    """Probe whether BlockSpec(pipeline_mode=pl.Buffered(1)) compiles on this backend."""
    try:
        spec_b = pl.BlockSpec((8, 128), lambda i: (0, 0), pipeline_mode=pl.Buffered(1))

        def _probe(a_ref, b_ref, o_ref):
            o_ref[...] = a_ref[...] + b_ref[...]

        x = jnp.zeros((8, 128), jnp.float32)
        out = pl.pallas_call(
            _probe,
            out_shape=jax.ShapeDtypeStruct((8, 128), jnp.float32),
            grid=(1,),
            in_specs=[pl.BlockSpec((8, 128), lambda i: (0, 0)), spec_b],
            out_specs=pl.BlockSpec((8, 128), lambda i: (0, 0)),
        )(x, x)
        jax.block_until_ready(out)
        return True
    except Exception:  # noqa: BLE001 - any failure means "don't use it"
        return False


def _resident_spec(shape, index_map):
    """BlockSpec for an operand whose block index never changes (weight / bias)."""
    if _buffered_single_supported():
        return pl.BlockSpec(shape, index_map, pipeline_mode=pl.Buffered(1))
    return pl.BlockSpec(shape, index_map)


# ---------------------------------------------------------------------------
# Wrapper
# ---------------------------------------------------------------------------
@functools.partial(jax.jit, static_argnames=("training", "drop", "block_target_bytes"))
def residual_drop(x_nchw, w_oi, bias, rng_key, *, training: bool, drop: float,
                  block_target_bytes=None):
    """Fused y = x + stochastic_depth(conv1x1(x)) for NCHW activations.

    x_nchw : (B, C, H, W)  float32 or bfloat16 (bf16 halves HBM traffic — the op
             is HBM-bound on every TPU generation; accumulation stays f32).
    w_oi   : (C_out, C_in) == (C, C)  PyTorch Conv2d weight (C, C, 1, 1) squeezed.
             Note: cast to x.dtype, so bf16 activations use bf16 weights (small
             deviation from PyTorch's f32 conv weights, within test tolerance).
    bias   : (C,)
    """
    B, C, H, W = x_nchw.shape
    HW = H * W
    assert w_oi.shape == (C, C), "expected PyTorch-layout (C_out, C_in) 1x1 weight"
    if training and drop > 0.0 and drop >= 1.0:
        raise ValueError("ResidualDrop: drop must be < 1.0 during training")

    x = x_nchw.reshape(B, C, HW)                    # free view, stays NCHW-contiguous
    w = w_oi.astype(x.dtype)                        # bf16 stays bf16 (MXU native)
    bias2 = bias.reshape(C, 1).astype(jnp.float32)  # tiny, keep f32

    itemsize = jnp.dtype(x.dtype).itemsize
    phys_vmem = _physical_vmem_bytes()
    target = int(block_target_bytes) if block_target_bytes else _target_block_bytes(phys_vmem)
    bblk, thw = _choose_blocks(B, C, HW, itemsize, target)
    grid = (B // bblk, pl.cdiv(HW, thw))            # ragged final HW tile is fine

    # Deterministic VMEM budget: double-buffered x-in + out, weight/bias budgeted
    # at 2 buffers (even though Buffered(1) is requested), plus Mosaic slack.
    x_blk_bytes = bblk * C * thw * itemsize
    resident_bytes = C * C * itemsize + C * 4
    vmem_needed = 4 * x_blk_bytes + 2 * resident_bytes
    vmem_limit = max(vmem_needed + (8 << 20), 32 << 20)
    vmem_limit = int(min(vmem_limit, phys_vmem - (8 << 20)))

    xy_spec = pl.BlockSpec((bblk, C, thw), lambda b, h, *_: (b, 0, h))
    w_spec = _resident_spec((C, C), lambda b, h, *_: (0, 0))
    b_spec = _resident_spec((C, 1), lambda b, h, *_: (0, 0))
    cparams = pltpu.CompilerParams(
        dimension_semantics=("parallel", "parallel"),
        vmem_limit_bytes=vmem_limit,
    )
    out_shape = jax.ShapeDtypeStruct((B, C, HW), x.dtype)

    if training and drop > 0.0:
        # Per-sample stochastic-depth scale; matches torch.rand(B,1,1,1).ge_(drop)/(1-drop)
        keep = (jax.random.uniform(rng_key, (B,)) >= drop).astype(jnp.float32)
        scale = keep / (1.0 - drop)
        out = pl.pallas_call(
            functools.partial(_kernel_train, bblk=bblk),
            out_shape=out_shape,
            grid_spec=pltpu.PrefetchScalarGridSpec(
                num_scalar_prefetch=1,                 # scale -> SMEM
                grid=grid,
                in_specs=[xy_spec, w_spec, b_spec],
                out_specs=xy_spec,
            ),
            compiler_params=cparams,
        )(scale, x, w, bias2)
    else:
        out = pl.pallas_call(
            functools.partial(_kernel_eval, bblk=bblk),
            out_shape=out_shape,
            grid_spec=pltpu.PrefetchScalarGridSpec(
                num_scalar_prefetch=0,
                grid=grid,
                in_specs=[xy_spec, w_spec, b_spec],
                out_specs=xy_spec,
            ),
            compiler_params=cparams,
        )(x, w, bias2)

    return out.reshape(B, C, H, W)


# ---------------------------------------------------------------------------
# Pure-JAX reference (PyTorch-orientation weight), all-f32
# ---------------------------------------------------------------------------
def _reference(x_nchw, w_oi, bias, scale):
    xf = x_nchw.astype(jnp.float32)
    y = jnp.einsum("oc,bchw->bohw", w_oi.astype(jnp.float32), xf)
    y = y + bias.astype(jnp.float32)[None, :, None, None]
    return xf + y * scale[:, None, None, None]


if __name__ == "__main__":
    key = jax.random.PRNGKey(0)
    k_x, k_w, k_b, k_drop = jax.random.split(key, 4)

    B, C, H, W = 2, 32, 16, 16
    x = jax.random.normal(k_x, (B, C, H, W), jnp.float32)
    w = jax.random.normal(k_w, (C, C), jnp.float32) * 0.05   # (C_out, C_in)
    bias = jax.random.normal(k_b, (C,), jnp.float32) * 0.01
    ones = jnp.ones((B,), jnp.float32)

    # --- eval path: y = x + m(x) -------------------------------------------
    out_eval = jax.block_until_ready(
        residual_drop(x, w, bias, k_drop, training=False, drop=0.1))
    assert jnp.allclose(out_eval, _reference(x, w, bias, ones), atol=1e-4, rtol=1e-4)

    # --- training path: per-sample stochastic-depth scale -------------------
    drop = 0.5
    out_train = jax.block_until_ready(
        residual_drop(x, w, bias, k_drop, training=True, drop=drop))
    keep = (jax.random.uniform(k_drop, (B,)) >= drop).astype(jnp.float32)
    ref_train = _reference(x, w, bias, keep / (1.0 - drop))
    assert jnp.allclose(out_train, ref_train, atol=1e-4, rtol=1e-4)

    # --- bf16 storage path (halved HBM traffic), f32 accumulation -----------
    x_bf = x.astype(jnp.bfloat16)
    out_bf = jax.block_until_ready(
        residual_drop(x_bf, w, bias, k_drop, training=False, drop=0.0))
    ref_bf = _reference(x_bf.astype(jnp.float32), w.astype(jnp.bfloat16), bias, ones)
    assert jnp.allclose(out_bf.astype(jnp.float32), ref_bf, atol=5e-2, rtol=5e-2)

    # --- ragged cdiv HW tiling (forced small budget): HW=1600, thw=512 -------
    x_r = jax.random.normal(k_x, (B, C, 40, 40), jnp.float32)
    out_r = jax.block_until_ready(
        residual_drop(x_r, w, bias, k_drop, training=False, drop=0.0,
                      block_target_bytes=64 * 1024))
    assert jnp.allclose(out_r, _reference(x_r, w, bias, ones), atol=1e-4, rtol=1e-4)

    # --- EfficientViT-style non-128-multiple spatial size (HW=49) ------------
    x_s = jax.random.normal(k_x, (B, C, 7, 7), jnp.float32)
    out_s = jax.block_until_ready(
        residual_drop(x_s, w, bias, k_drop, training=False, drop=0.0))
    assert jnp.allclose(out_s, _reference(x_s, w, bias, ones), atol=1e-4, rtol=1e-4)

    print("KERNEL_OK")
</pallas_src>

<mosaic_0001>
module attributes {stable_mosaic.version = 11 : i64} {
  func.func @_kernel_eval(%arg0: i32, %arg1: i32, %arg2: memref<2x32x256xf32, #tpu.memory_space<vmem>>, %arg3: memref<32x32xf32, #tpu.memory_space<vmem>>, %arg4: memref<32x1xf32, #tpu.memory_space<vmem>>, %arg5: memref<2x32x256xf32, #tpu.memory_space<vmem>>) attributes {dimension_semantics = [#tpu.dimension_semantics<parallel>, #tpu.dimension_semantics<parallel>], iteration_bounds = array<i64: 1, 1>, scalar_prefetch = 0 : i64, scratch_operands = 0 : i64, tpu.core_type = #tpu.core_type<tc>, window_params = [{transform_indices = @transform_0, window_bounds = array<i64: 2, 32, 256>}, {pipeline_mode = #tpu.pipeline_mode<synchronous>, transform_indices = @transform_1, window_bounds = array<i64: 32, 32>}, {pipeline_mode = #tpu.pipeline_mode<synchronous>, transform_indices = @transform_2, window_bounds = array<i64: 32, 1>}, {transform_indices = @transform_3, window_bounds = array<i64: 2, 32, 256>}]} {
    %c0 = arith.constant 0 : index
    %c0_0 = arith.constant 0 : index
    %0 = vector.load %arg3[%c0, %c0_0] : memref<32x32xf32, #tpu.memory_space<vmem>>, vector<32x32xf32>
    %c0_1 = arith.constant 0 : index
    %c0_2 = arith.constant 0 : index
    %1 = vector.load %arg4[%c0_1, %c0_2] : memref<32x1xf32, #tpu.memory_space<vmem>>, vector<32x1xf32>
    %2 = vector.shape_cast %1 : vector<32x1xf32> to vector<32x1xf32>
    %3 = vector.broadcast %2 : vector<32x1xf32> to vector<32x256xf32>
    %c0_i32 = arith.constant 0 : i32
    %4 = arith.index_cast %c0_i32 : i32 to index
    %c0_3 = arith.constant 0 : index
    %c0_4 = arith.constant 0 : index
    %5 = vector.load %arg2[%4, %c0_3, %c0_4] : memref<2x32x256xf32, #tpu.memory_space<vmem>>, vector<1x32x256xf32>
    %6 = vector.shape_cast %5 : vector<1x32x256xf32> to vector<32x256xf32>
    %cst = arith.constant dense<0.000000e+00> : vector<32x256xf32>
    %7 = tpu.matmul %0, %6, %cst {dimension_numbers = #tpu.dot_dimension_numbers<[1], [0], [0], [1], [0, 0, 1, 1], [], []>} : vector<32x32xf32>, vector<32x256xf32>, vector<32x256xf32> -> vector<32x256xf32>
    %8 = arith.addf %7, %3 : vector<32x256xf32>
    %9 = arith.addf %6, %8 : vector<32x256xf32>
    %10 = arith.index_cast %c0_i32 : i32 to index
    %c0_5 = arith.constant 0 : index
    %c0_6 = arith.constant 0 : index
    %11 = vector.load %arg5[%10, %c0_5, %c0_6] : memref<2x32x256xf32, #tpu.memory_space<vmem>>, vector<1x32x256xf32>
    %12 = vector.shape_cast %11 : vector<1x32x256xf32> to vector<32x256xf32>
    %13 = vector.shape_cast %9 : vector<32x256xf32> to vector<1x32x256xf32>
    tpu.vector_store %arg5[%10, %c0_5, %c0_6], %13 {strides = array<i32>} : memref<2x32x256xf32, #tpu.memory_space<vmem>>, vector<1x32x256xf32>,
    %c1_i32 = arith.constant 1 : i32
    %14 = arith.index_cast %c1_i32 : i32 to index
    %c0_7 = arith.constant 0 : index
    %c0_8 = arith.constant 0 : index
    %15 = vector.load %arg2[%14, %c0_7, %c0_8] : memref<2x32x256xf32, #tpu.memory_space<vmem>>, vector<1x32x256xf32>
    %16 = vector.shape_cast %15 : vector<1x32x256xf32> to vector<32x256xf32>
    %cst_9 = arith.constant dense<0.000000e+00> : vector<32x256xf32>
    %17 = tpu.matmul %0, %16, %cst_9 {dimension_numbers = #tpu.dot_dimension_numbers<[1], [0], [0], [1], [0, 0, 1, 1], [], []>} : vector<32x32xf32>, vector<32x256xf32>, vector<32x256xf32> -> vector<32x256xf32>
    %18 = arith.addf %17, %3 : vector<32x256xf32>
    %19 = arith.addf %16, %18 : vector<32x256xf32>
    %20 = arith.index_cast %c1_i32 : i32 to index
    %c0_10 = arith.constant 0 : index
    %c0_11 = arith.constant 0 : index
    %21 = vector.load %arg5[%20, %c0_10, %c0_11] : memref<2x32x256xf32, #tpu.memory_space<vmem>>, vector<1x32x256xf32>
    %22 = vector.shape_cast %21 : vector<1x32x256xf32> to vector<32x256xf32>
    %23 = vector.shape_cast %19 : vector<32x256xf32> to vector<1x32x256xf32>
    tpu.vector_store %arg5[%20, %c0_10, %c0_11], %23 {strides = array<i32>} : memref<2x32x256xf32, #tpu.memory_space<vmem>>, vector<1x32x256xf32>,
    %c2_i32 = arith.constant 2 : i32
    return
  }
  func.func @transform_0(%arg0: i32, %arg1: i32) -> (i32, i32, i32) {
    %c0_i32 = arith.constant 0 : i32
    %c0_i32_0 = arith.constant 0 : i32
    return %arg0, %c0_i32, %arg1 : i32, i32, i32
  }
  func.func @transform_1(%arg0: i32, %arg1: i32) -> (i32, i32) {
    %c0_i32 = arith.constant 0 : i32
    %c0_i32_0 = arith.constant 0 : i32
    %c0_i32_1 = arith.constant 0 : i32
    return %c0_i32, %c0_i32_0 : i32, i32
  }
  func.func @transform_2(%arg0: i32, %arg1: i32) -> (i32, i32) {
    %c0_i32 = arith.constant 0 : i32
    %c0_i32_0 = arith.constant 0 : i32
    %c0_i32_1 = arith.constant 0 : i32
    return %c0_i32, %c0_i32_0 : i32, i32
  }
  func.func @transform_3(%arg0: i32, %arg1: i32) -> (i32, i32, i32) {
    %c0_i32 = arith.constant 0 : i32
    %c0_i32_0 = arith.constant 0 : i32
    return %arg0, %c0_i32, %arg1 : i32, i32, i32
  }
}

</mosaic_0001>

<bundles_post_ra>
// kernel: residual_drop.1
= control target key start
LH: loop header
LB: loop body
LE: loop exit
PB: predicated region body
PF: predicated region fallthrough
CT: control target
= control target key end

     0   :  { %v331_v3 = vmov 0.0   ;;  %v332_v8 = vmov 0   ;;  %vm50_vm0 = vcmask 261120   ;;  %s545_s0 = inlined_call_operand.vmem [shape: f32[2,32,256], index: 0, kind: input, shape index: {}]   ;;  %s546_s2 = inlined_call_operand.vmem [shape: f32[32,1], index: 2, kind: input, shape index: {}]   ;;  %s547_s1 = inlined_call_operand.vmem [shape: f32[32,32], index: 1, kind: input, shape index: {}]   ;;  %s548_s3 = inlined_call_operand.vmem [shape: f32[2,32,256], index: 3, kind: output, shape index: {}]  }
   0x1   :  { %v356_v0 = vld [vmem:[%s545_s0 + $0x8] sm:$0xff]  ;;  %v361_v1 = vld [vmem:[%s545_s0 + $0x18] sm:$0xff]  ;;  %127 = vmatprep.mubr.f32.mxu0 %v331_v3  ;;  %241 = vmatprep.mubr.f32.mxu1 %v331_v3  ;;  %v378_v6 = vld [vmem:[%s545_s0] sm:$0xff] }
   0x2   :  { %v366_v2 = vld [vmem:[%s545_s0 + $0x48] sm:$0xff]  ;;  %v311_v4 = vpack.c.bf16 %v361_v1, %v356_v0  ;;  %v373_v5 = vld [vmem:[%s545_s0 + $0x58] sm:$0xff]  ;;  %v383_v7 = vld [vmem:[%s545_s0 + $0x10] sm:$0xff]  ;;  %329 = vset.pattern.permute.xlu0 %v332_v8  ;;  %330 = vset.pattern.permute.xlu1 %v332_v8 }
   0x3   :  { %v319_v9 = vpack.c.bf16 %v373_v5, %v366_v2  ;;  %v313_v10 = vpack.c.bf16 %v383_v7, %v378_v6  ;;  %v392_v11 = vld [vmem:[%s545_s0 + $0x40] sm:$0xff]  ;;  %v397_v12 = vld [vmem:[%s545_s0 + $0x50] sm:$0xff]  ;;  %v402_v13 = vld [vmem:[%s545_s0 + $0x28] sm:$0xff] }
   0x4   :  { %312 = vmatprep.subr.bf16.mxu0 %v311_v4  ;;  %v321_v14 = vpack.c.bf16 %v397_v12, %v392_v11  ;;  %v409_v15 = vld [vmem:[%s545_s0 + $0x38] sm:$0xff]  ;;  %v414_v16 = vld [vmem:[%s545_s0 + $0x68] sm:$0xff]  ;;  %v428_v20 = vld [vmem:[%s545_s0 + $0x20] sm:$0xff] }
   0x5   :  { %v419_v17 = vld [vmem:[%s545_s0 + $0x78] sm:$0xff]  ;;  %320 = vmatprep.subr.bf16.mxu1 %v319_v9  ;;  %314 = vmatpush1.bf16.msra.mxu0 %v313_v10  ;;  %v315_v18 = vpack.c.bf16 %v409_v15, %v402_v13  ;;  %v433_v21 = vld [vmem:[%s545_s0 + $0x30] sm:$0xff]  ;;  %v438_v22 = vld [vmem:[%s545_s0 + $0x60] sm:$0xff] }
   0x6   :  { %v323_v19 = vpack.c.bf16 %v419_v17, %v414_v16  ;;  %322 = vmatpush1.bf16.msra.mxu1 %v321_v14  ;;  %v317_v23 = vpack.c.bf16 %v433_v21, %v428_v20  ;;  %v445_v24 = vld [vmem:[%s545_s0 + $0x70] sm:$0xff]  ;;  %v18_v26 = vld [vmem:[%s546_s2] sm:$0xff]  ;;  %v19_v29 = vld [vmem:[%s546_s2 + $0x8] sm:$0xff] }
   0x7   :  { %316 = vmatprep.subr.bf16.mxu0 %v315_v18  ;;  %v325_v25 = vpack.c.bf16 %v445_v24, %v438_v22  ;;  %24 = vperm.xlu0 %329, %v18_v26   ;;  %v20_v27 = vld [vmem:[%s546_s2 + $0x10] sm:$0xff]  ;;  %v14_v28 = vld [vmem:[%s547_s1] sm:$0xff]  ;;  %v21_v30 = vld [vmem:[%s546_s2 + $0x18] sm:$0xff] }
   0x8   :  { %324 = vmatprep.subr.bf16.mxu1 %v323_v19  ;;  %34 = vperm.xlu1 %330, %v20_v27   ;;  %v15_v31 = vld [vmem:[%s547_s1 + $0x8] sm:$0xff]  ;;  %v16_v32 = vld [vmem:[%s547_s1 + $0x10] sm:$0xff]  ;;  %v17_v33 = vld [vmem:[%s547_s1 + $0x18] sm:$0xff] }
   0x9   :  { %318 = vmatpush1.bf16.msra.mxu0 %v317_v23 }
   0xa   :  { %326 = vmatpush1.bf16.msra.mxu1 %v325_v25 }
   0xb   :  { %29 = vperm.xlu0 %329, %v19_v29  }
   0xc   :  { %287 = vmatmul.mubr.msk.f32.vlgmr.msra.gmra.mrb[0].mxu0 %vm50_vm0, %v14_v28  ;;  %39 = vperm.xlu1 %330, %v21_v30  }
   0xd   :  { %299 = vmatmul.mubr.msk.f32.vlgmr.msra.gmra.mrb[0].mxu1 %vm50_vm0, %v14_v28  ;;  %133 = vmatprep.mubr.f32.mxu0 %v331_v3 }
   0xe   :  { %247 = vmatprep.mubr.f32.mxu1 %v331_v3 }
  0x10   :  { %288 = vmatmul.mubr.msk.f32.gmra.mrb[2].mxu0 %vm50_vm0, %v15_v31 }
  0x11   :  { %300 = vmatmul.mubr.msk.f32.gmra.mrb[2].mxu1 %vm50_vm0, %v15_v31  ;;  %139 = vmatprep.mubr.f32.mxu0 %v331_v3 }
  0x12   :  { %253 = vmatprep.mubr.f32.mxu1 %v331_v3 }
  0x14   :  { %289 = vmatmul.mubr.msk.f32.gmra.mrb[4].mxu0 %vm50_vm0, %v16_v32 }
  0x15   :  { %301 = vmatmul.mubr.msk.f32.gmra.mrb[4].mxu1 %vm50_vm0, %v16_v32  ;;  %145 = vmatprep.mubr.f32.mxu0 %v331_v3 }
  0x16   :  { %259 = vmatprep.mubr.f32.mxu1 %v331_v3 }
  0x18   :  { %290 = vmatmul.mubr.msk.f32.gmra.mrb[6].mxu0 %vm50_vm0, %v17_v33 }
  0x19   :  { %302 = vmatmul.mubr.msk.f32.gmra.mrb[6].mxu1 %vm50_vm0, %v17_v33 }
  0x86   :  { %v25_v34 = vpop.permute.xlu0 %24 }
  0x87   :  { %v35_v53 = vpop.permute.xlu1 %34 }
  0x8a   :  { %v30_v42 = vpop.permute.xlu0 %29 }
  0xdf   :  { %v129_v35 = vpop.f32.mrb[0].mxu0 }
  0xe0   :  { %v130_v36 = vadd.f32 %v129_v35, %v25_v34  ;;  %v243_v37 = vpop.f32.mrb[0].mxu1  ;;  %v131_v38 = vpop.f32.mrb[1].mxu0 }
  0xe1   :  { %v244_v39 = vadd.f32 %v243_v37, %v25_v34  ;;  %v132_v40 = vadd.f32 %v131_v38, %v25_v34  ;;  %v245_v41 = vpop.f32.mrb[1].mxu1 }
  0xe2   :  { %v152_v43 = vadd.f32 %v130_v36, %v378_v6  ;;  %v246_v44 = vadd.f32 %v245_v41, %v25_v34 }
  0xe3   :  { %v266_v45 = vadd.f32 %v392_v11, %v244_v39  ;;  %v153_v46 = vadd.f32 %v132_v40, %v356_v0  ;;  %v135_v47 = vpop.f32.mrb[2].mxu0 }
  0xe4   :  { %160 = vst [vmem:[%s548_s3] sm:$0xff] %v152_v43  ;;  %v267_v48 = vadd.f32 %v366_v2, %v246_v44  ;;  %v136_v49 = vadd.f32 %v135_v47, %v30_v42  ;;  %v249_v50 = vpop.f32.mrb[2].mxu1  ;;  %v137_v51 = vpop.f32.mrb[3].mxu0 }
  0xe5   :  { %303 = vst [vmem:[%s548_s3 + $0x40] sm:$0xff] %v266_v45  ;;  %161 = vst [vmem:[%s548_s3 + $0x8] sm:$0xff] %v153_v46  ;;  %v250_v52 = vadd.f32 %v249_v50, %v30_v42  ;;  %v138_v54 = vadd.f32 %v137_v51, %v30_v42  ;;  %v251_v55 = vpop.f32.mrb[3].mxu1 }
  0xe6   :  { %304 = vst [vmem:[%s548_s3 + $0x48] sm:$0xff] %v267_v48  ;;  %v154_v56 = vadd.f32 %v136_v49, %v383_v7  ;;  %v252_v57 = vadd.f32 %v251_v55, %v30_v42  ;;  %v40_v7 = vpop.permute.xlu1 %39 }
  0xe7   :  { %v268_v58 = vadd.f32 %v397_v12, %v250_v52  ;;  %v155_v59 = vadd.f32 %v138_v54, %v361_v1  ;;  %v141_v60 = vpop.f32.mrb[4].mxu0 }
  0xe8   :  { %162 = vst [vmem:[%s548_s3 + $0x10] sm:$0xff] %v154_v56  ;;  %v269_v61 = vadd.f32 %v373_v5, %v252_v57  ;;  %v142_v62 = vadd.f32 %v141_v60, %v35_v53  ;;  %v255_v63 = vpop.f32.mrb[4].mxu1  ;;  %v143_v0 = vpop.f32.mrb[5].mxu0 }
  0xe9   :  { %305 = vst [vmem:[%s548_s3 + $0x50] sm:$0xff] %v268_v58  ;;  %163 = vst [vmem:[%s548_s3 + $0x18] sm:$0xff] %v155_v59  ;;  %v256_v2 = vadd.f32 %v255_v63, %v35_v53  ;;  %v144_v1 = vadd.f32 %v143_v0, %v35_v53  ;;  %v257_v3 = vpop.f32.mrb[5].mxu1 }
  0xea   :  { %306 = vst [vmem:[%s548_s3 + $0x58] sm:$0xff] %v269_v61  ;;  %v156_v4 = vadd.f32 %v142_v62, %v428_v20  ;;  %v258_v5 = vadd.f32 %v257_v3, %v35_v53 }
  0xeb   :  { %v270_v6 = vadd.f32 %v438_v22, %v256_v2  ;;  %v157_v8 = vadd.f32 %v144_v1, %v402_v13  ;;  %v147_v9 = vpop.f32.mrb[6].mxu0 }
  0xec   :  { %164 = vst [vmem:[%s548_s3 + $0x20] sm:$0xff] %v156_v4  ;;  %v271_v10 = vadd.f32 %v414_v16, %v258_v5  ;;  %v148_v11 = vadd.f32 %v147_v9, %v40_v7  ;;  %v261_v12 = vpop.f32.mrb[6].mxu1  ;;  %v149_v14 = vpop.f32.mrb[7].mxu0 }
  0xed   :  { %307 = vst [vmem:[%s548_s3 + $0x60] sm:$0xff] %v270_v6  ;;  %165 = vst [vmem:[%s548_s3 + $0x28] sm:$0xff] %v157_v8  ;;  %v262_v18 = vadd.f32 %v261_v12, %v40_v7  ;;  %v150_v13 = vadd.f32 %v149_v14, %v40_v7  ;;  %v263_v19 = vpop.f32.mrb[7].mxu1 }
  0xee   :  { %308 = vst [vmem:[%s548_s3 + $0x68] sm:$0xff] %v271_v10  ;;  %v158_v16 = vadd.f32 %v148_v11, %v433_v21  ;;  %v264_v20 = vadd.f32 %v263_v19, %v40_v7 }
  0xef   :  { %v272_v22 = vadd.f32 %v445_v24, %v262_v18  ;;  %v159_v23 = vadd.f32 %v150_v13, %v409_v15 }
  0xf0   :  { %166 = vst [vmem:[%s548_s3 + $0x30] sm:$0xff] %v158_v16  ;;  %v273_v25 = vadd.f32 %v419_v17, %v264_v20 }
  0xf1   :  { %309 = vst [vmem:[%s548_s3 + $0x70] sm:$0xff] %v272_v22  ;;  %167 = vst [vmem:[%s548_s3 + $0x38] sm:$0xff] %v159_v23 }
  0xf2   :  { %310 = vst [vmem:[%s548_s3 + $0x78] sm:$0xff] %v273_v25 }

</bundles_post_ra>
